<compile_context>
chip_gen: v7x
topology: tpu7x:2x2x1
jax: 0.10.0
libtpu: 0.0.40
codegen_flags: <defaults>
</compile_context>

<pallas_src>
import functools

import jax
import jax.numpy as jnp
from jax.experimental import pallas as pl
from jax.experimental.pallas import tpu as pltpu


def _round_up(x: int, m: int) -> int:
    return (x + m - 1) // m * m


def _model_with_loss_kernel(x_ref, w_ref, b_ref, lab_ref, preds_ref, nll_ref,
                            *, tk, w_resident):
    # x:   (TM, TK)          f32   (cast to bf16 in-kernel)
    # w:   (D_pad, K_pad)    bf16  if resident, else (TK, K_pad) bf16
    # b:   (1, K_pad)        f32   (padded classes carry -1e30)
    # lab: (TM, 1)           i32   (padded batch rows carry -1)
    k = pl.program_id(1)

    @pl.when(k == 0)
    def _():
        preds_ref[...] = jnp.zeros_like(preds_ref)

    # In-kernel cast: single f32 HBM pass for x, bf16 conversion on the VPU.
    x_tile = x_ref[...].astype(jnp.bfloat16)                        # (TM, TK)

    if w_resident:
        off = pl.multiple_of(k * tk, 128)
        w_tile = w_ref[pl.ds(off, tk), :]                           # (TK, K_pad)
    else:
        w_tile = w_ref[...]                                         # (TK, K_pad)

    # Canonical MXU orientation: (TM, TK) x (TK, K_pad) -> f32, accumulated
    # directly into the VMEM-resident output block (no separate scratch).
    preds_ref[...] += jax.lax.dot_general(
        x_tile,
        w_tile,
        dimension_numbers=(((1,), (0,)), ((), ())),
        preferred_element_type=jnp.float32,
    )

    @pl.when(k == pl.num_programs(1) - 1)
    def _():
        logits = preds_ref[...] + b_ref[...]                        # (TM, K_pad)
        preds_ref[...] = logits

        # CrossEntropyLoss: numerically stable log-softmax + one-hot NLL.
        m = jnp.max(logits, axis=-1, keepdims=True)
        shifted = logits - m
        lse = jnp.log(jnp.sum(jnp.exp(shifted), axis=-1, keepdims=True)) + m
        log_probs = logits - lse

        labels = lab_ref[...]                                       # (TM, 1)
        cls_ids = jax.lax.broadcasted_iota(jnp.int32, logits.shape, 1)
        onehot = (cls_ids == labels).astype(jnp.float32)            # 0 on pads
        nll = -jnp.sum(onehot * log_probs, axis=-1, keepdims=True)  # (TM, 1)
        nll_ref[...] = jnp.broadcast_to(nll, nll_ref.shape)         # lane-dense


def model_with_loss(images, labels, weight, bias):
    """Equivalent of ModelWithLoss.forward(images, labels) -> (preds, loss).

    images : (B, C, H, W) float32 (NCHW)
    labels : (B,) int32 class indices
    weight : (K, D) float32  (PyTorch Linear convention, D = C*H*W)
    bias   : (K,)  float32
    """
    B = int(images.shape[0])
    D = 1
    for s in images.shape[1:]:
        D *= int(s)
    K = int(weight.shape[0])

    K_pad = _round_up(K, 128)
    D_pad = _round_up(D, 128)

    # Reduction tile: largest multiple of 128 dividing D_pad, capped at 2048.
    TK = 128
    for cand in range(min(2048, D_pad), 127, -128):
        if D_pad % cand == 0:
            TK = cand
            break

    # Batch tile: multiple of 16 (bf16 sublane packing), capped at 512; when the
    # batch is big enough, keep >=2 batch tiles so both v7x TensorCores get work.
    TM = min(_round_up(B, 16), 512)
    if B >= 32 and _round_up(B, TM) // TM < 2:
        TM = _round_up((B + 1) // 2, 16)
    B_pad = _round_up(B, TM)

    # Weight: pre-transpose/pad once to (D_pad, K_pad) bf16 (canonical MXU RHS).
    # TODO(synk): in a real training loop, cache this prepared weight across steps.
    w_t = jnp.pad(
        weight.astype(jnp.float32).T, ((0, D_pad - D), (0, K_pad - K))
    ).astype(jnp.bfloat16)                                          # (D_pad, K_pad)

    # Keep the whole weight VMEM-resident (DMA'd exactly once for the entire
    # grid) when it comfortably fits the v7x budget; otherwise stream tiles.
    w_bytes = D_pad * K_pad * 2
    w_resident = w_bytes <= 20 * 1024 * 1024

    b2 = jnp.concatenate(
        [bias.astype(jnp.float32), jnp.full((K_pad - K,), -1e30, jnp.float32)]
    ).reshape(1, K_pad)

    # x stays f32 (bf16 cast happens in-kernel); pads are no-ops when aligned.
    x = jnp.pad(images.reshape(B, D).astype(jnp.float32),
                ((0, B_pad - B), (0, D_pad - D)))

    lab = jnp.pad(labels.astype(jnp.int32), (0, B_pad - B),
                  constant_values=-1).reshape(B_pad, 1)

    grid = (B_pad // TM, D_pad // TK)

    if w_resident:
        w_spec = pl.BlockSpec((D_pad, K_pad), lambda i, k: (0, 0))
        w_block_bytes = w_bytes
    else:
        w_spec = pl.BlockSpec((TK, K_pad), lambda i, k: (k, 0))
        w_block_bytes = TK * K_pad * 2

    # VMEM budget (double-buffered streamed operands + outputs), with headroom.
    est_vmem = (2 * TM * TK * 4        # x tiles (f32)
                + 2 * w_block_bytes    # weight
                + 2 * TM * K_pad * 4   # preds output
                + 2 * TM * 128 * 4     # nll output
                + 2 * K_pad * 4        # bias
                + 2 * TM * 4)          # labels
    vmem_limit = int(min(56 * 1024 * 1024, max(32 * 1024 * 1024, 2 * est_vmem)))

    kernel = functools.partial(_model_with_loss_kernel, tk=TK,
                               w_resident=w_resident)

    preds_pad, nll_pad = pl.pallas_call(
        kernel,
        out_shape=(
            jax.ShapeDtypeStruct((B_pad, K_pad), jnp.float32),
            jax.ShapeDtypeStruct((B_pad, 128), jnp.float32),
        ),
        grid_spec=pltpu.PrefetchScalarGridSpec(
            num_scalar_prefetch=0,
            grid=grid,
            in_specs=[
                pl.BlockSpec((TM, TK), lambda i, k: (i, k)),      # x tile (f32)
                w_spec,                                           # weight (bf16)
                pl.BlockSpec((1, K_pad), lambda i, k: (0, 0)),    # bias
                pl.BlockSpec((TM, 1), lambda i, k: (i, 0)),       # labels
            ],
            out_specs=[
                pl.BlockSpec((TM, K_pad), lambda i, k: (i, 0)),   # logits (preds)
                pl.BlockSpec((TM, 128), lambda i, k: (i, 0)),     # per-row NLL
            ],
        ),
        compiler_params=pltpu.CompilerParams(
            dimension_semantics=("parallel", "arbitrary"),
            vmem_limit_bytes=vmem_limit,
        ),
    )(x, w_t, b2, lab)

    preds = preds_pad[:B, :K]
    loss = jnp.sum(nll_pad[:B, 0]) / jnp.float32(B)   # mean over the TRUE batch
    return preds, loss


if __name__ == "__main__":
    # Small shapes consistent with the module: batch=2, channels=4, spatial=16x16,
    # num_classes=10.
    B, C, H, W = 2, 4, 16, 16
    K = 10
    D = C * H * W

    key = jax.random.PRNGKey(0)
    k_img, k_lab, k_w, k_b = jax.random.split(key, 4)

    images = jax.random.normal(k_img, (B, C, H, W), dtype=jnp.float32)
    labels = jax.random.randint(k_lab, (B,), 0, K, dtype=jnp.int32)

    # Deterministic parameter init for the synthetic linear "model".
    weight = jax.random.normal(k_w, (K, D), dtype=jnp.float32) * 0.02
    bias = jax.random.normal(k_b, (K,), dtype=jnp.float32) * 0.02

    preds, loss = model_with_loss(images, labels, weight, bias)
    jax.block_until_ready((preds, loss))

    # Reference 1: bf16-input / f32-accumulate reference (matches kernel precision).
    x_flat = images.reshape(B, D)
    x_bf = x_flat.astype(jnp.bfloat16).astype(jnp.float32)
    w_bf = weight.astype(jnp.bfloat16).astype(jnp.float32)
    logits_bf = x_bf @ w_bf.T + bias
    logp_bf = jax.nn.log_softmax(logits_bf, axis=-1)
    loss_bf = -jnp.mean(logp_bf[jnp.arange(B), labels])
    assert jnp.allclose(preds, logits_bf, atol=2e-3, rtol=2e-3)
    assert jnp.allclose(loss, loss_bf, atol=2e-3, rtol=2e-3)

    # Reference 2: full-f32 module semantics (loose tolerance for bf16 MXU inputs).
    logits_f32 = x_flat @ weight.T + bias
    logp_f32 = jax.nn.log_softmax(logits_f32, axis=-1)
    loss_f32 = -jnp.mean(logp_f32[jnp.arange(B), labels])
    assert jnp.allclose(preds, logits_f32, atol=5e-2, rtol=5e-2)
    assert jnp.allclose(loss, loss_f32, atol=5e-2, rtol=5e-2)

    print("KERNEL_OK")
</pallas_src>

<mosaic_0001>
module attributes {stable_mosaic.version = 11 : i64} {
  func.func @_model_with_loss_kernel(%arg0: i32, %arg1: i32, %arg2: memref<16x1024xf32, #tpu.memory_space<vmem>>, %arg3: memref<1024x128xbf16, #tpu.memory_space<vmem>>, %arg4: memref<1x128xf32, #tpu.memory_space<vmem>>, %arg5: memref<16x1xi32, #tpu.memory_space<vmem>>, %arg6: memref<16x128xf32, #tpu.memory_space<vmem>>, %arg7: memref<16x128xf32, #tpu.memory_space<vmem>>) attributes {dimension_semantics = [#tpu.dimension_semantics<parallel>, #tpu.dimension_semantics<arbitrary>], iteration_bounds = array<i64: 1, 1>, scalar_prefetch = 0 : i64, scratch_operands = 0 : i64, tpu.core_type = #tpu.core_type<tc>, window_params = [{transform_indices = @transform_0, window_bounds = array<i64: 16, 1024>}, {pipeline_mode = #tpu.pipeline_mode<synchronous>, transform_indices = @transform_1, window_bounds = array<i64: 1024, 128>}, {pipeline_mode = #tpu.pipeline_mode<synchronous>, transform_indices = @transform_2, window_bounds = array<i64: 1, 128>}, {transform_indices = @transform_3, window_bounds = array<i64: 16, 1>}, {transform_indices = @transform_4, window_bounds = array<i64: 16, 128>}, {transform_indices = @transform_5, window_bounds = array<i64: 16, 128>}]} {
    %c0_i32 = arith.constant 0 : i32
    %0 = arith.cmpi eq, %arg1, %c0_i32 : i32
    %1 = arith.extui %0 : i1 to i32
    %c0_i32_0 = arith.constant 0 : i32
    %2 = arith.cmpi ne, %1, %c0_i32_0 : i32
    scf.if %2 {
      %cst_9 = arith.constant 0.000000e+00 : f32
      %16 = vector.broadcast %cst_9 : f32 to vector<16x128xf32>
      %c0_10 = arith.constant 0 : index
      %c0_11 = arith.constant 0 : index
      %17 = vector.load %arg6[%c0_10, %c0_11] : memref<16x128xf32, #tpu.memory_space<vmem>>, vector<16x128xf32>
      tpu.vector_store %arg6[%c0_10, %c0_11], %16 {strides = array<i32>} : memref<16x128xf32, #tpu.memory_space<vmem>>, vector<16x128xf32>,
    } else {
    }
    %c0 = arith.constant 0 : index
    %c0_1 = arith.constant 0 : index
    %3 = vector.load %arg2[%c0, %c0_1] : memref<16x1024xf32, #tpu.memory_space<vmem>>, vector<16x1024xf32>
    %4 = arith.truncf %3 : vector<16x1024xf32> to vector<16x1024xbf16>
    %c1024_i32 = arith.constant 1024 : i32
    %5 = arith.muli %arg1, %c1024_i32 : i32
    %6 = tpu.assume_multiple %5, 128 : i32
    %7 = arith.index_cast %6 : i32 to index
    %c0_2 = arith.constant 0 : index
    %8 = vector.load %arg3[%7, %c0_2] : memref<1024x128xbf16, #tpu.memory_space<vmem>>, vector<1024x128xbf16>
    %c0_3 = arith.constant 0 : index
    %c0_4 = arith.constant 0 : index
    %9 = vector.load %arg6[%c0_3, %c0_4] : memref<16x128xf32, #tpu.memory_space<vmem>>, vector<16x128xf32>
    %cst = arith.constant dense<0.000000e+00> : vector<16x128xf32>
    %10 = tpu.matmul %4, %8, %cst {dimension_numbers = #tpu.dot_dimension_numbers<[1], [0], [0], [1], [0, 0, 1, 1], [], []>} : vector<16x1024xbf16>, vector<1024x128xbf16>, vector<16x128xf32> -> vector<16x128xf32>
    %11 = arith.addf %9, %10 : vector<16x128xf32>
    %c0_5 = arith.constant 0 : index
    %c0_6 = arith.constant 0 : index
    %12 = vector.load %arg6[%c0_5, %c0_6] : memref<16x128xf32, #tpu.memory_space<vmem>>, vector<16x128xf32>
    tpu.vector_store %arg6[%c0_5, %c0_6], %11 {strides = array<i32>} : memref<16x128xf32, #tpu.memory_space<vmem>>, vector<16x128xf32>,
    %c0_i32_7 = arith.constant 0 : i32
    %13 = arith.cmpi eq, %arg1, %c0_i32_7 : i32
    %14 = arith.extui %13 : i1 to i32
    %c0_i32_8 = arith.constant 0 : i32
    %15 = arith.cmpi ne, %14, %c0_i32_8 : i32
    scf.if %15 {
      %c0_9 = arith.constant 0 : index
      %c0_10 = arith.constant 0 : index
      %16 = vector.load %arg6[%c0_9, %c0_10] : memref<16x128xf32, #tpu.memory_space<vmem>>, vector<16x128xf32>
      %c0_11 = arith.constant 0 : index
      %c0_12 = arith.constant 0 : index
      %17 = vector.load %arg4[%c0_11, %c0_12] : memref<1x128xf32, #tpu.memory_space<vmem>>, vector<1x128xf32>
      %18 = vector.broadcast %17 : vector<1x128xf32> to vector<16x128xf32>
      %19 = arith.addf %16, %18 : vector<16x128xf32>
      %c0_13 = arith.constant 0 : index
      %c0_14 = arith.constant 0 : index
      %20 = vector.load %arg6[%c0_13, %c0_14] : memref<16x128xf32, #tpu.memory_space<vmem>>, vector<16x128xf32>
      tpu.vector_store %arg6[%c0_13, %c0_14], %19 {strides = array<i32>} : memref<16x128xf32, #tpu.memory_space<vmem>>, vector<16x128xf32>,
      %cst_15 = arith.constant dense<0xFF800000> : vector<16xf32>
      %21 = vector.multi_reduction <maximumf>, %19, %cst_15 [1] : vector<16x128xf32> to vector<16xf32>
      %22 = vector.shape_cast %21 : vector<16xf32> to vector<16x1xf32>
      %23 = vector.broadcast %22 : vector<16x1xf32> to vector<16x128xf32>
      %24 = arith.subf %19, %23 : vector<16x128xf32>
      %25 = math.exp %24 : vector<16x128xf32>
      %cst_16 = arith.constant dense<0.000000e+00> : vector<16xf32>
      %26 = vector.multi_reduction <add>, %25, %cst_16 [1] : vector<16x128xf32> to vector<16xf32>
      %27 = vector.shape_cast %26 : vector<16xf32> to vector<16x1xf32>
      %28 = math.log %27 : vector<16x1xf32>
      %29 = arith.addf %28, %22 : vector<16x1xf32>
      %30 = vector.broadcast %29 : vector<16x1xf32> to vector<16x128xf32>
      %31 = arith.subf %19, %30 : vector<16x128xf32>
      %c0_17 = arith.constant 0 : index
      %c0_18 = arith.constant 0 : index
      %32 = vector.load %arg5[%c0_17, %c0_18] : memref<16x1xi32, #tpu.memory_space<vmem>>, vector<16x1xi32>
      %33 = tpu.iota {dimensions = array<i32: 1>} : vector<16x128xi32>
      %34 = vector.broadcast %32 : vector<16x1xi32> to vector<16x128xi32>
      %35 = arith.cmpi eq, %33, %34 : vector<16x128xi32>
      %36 = arith.extui %35 : vector<16x128xi1> to vector<16x128xi32>
      %37 = arith.sitofp %36 : vector<16x128xi32> to vector<16x128xf32>
      %38 = arith.mulf %37, %31 : vector<16x128xf32>
      %cst_19 = arith.constant dense<0.000000e+00> : vector<16xf32>
      %39 = vector.multi_reduction <add>, %38, %cst_19 [1] : vector<16x128xf32> to vector<16xf32>
      %40 = vector.shape_cast %39 : vector<16xf32> to vector<16x1xf32>
      %cst_20 = arith.constant 0.000000e+00 : f32
      %41 = vector.broadcast %cst_20 : f32 to vector<16x1xf32>
      %42 = arith.subf %41, %40 : vector<16x1xf32>
      %43 = vector.shape_cast %42 : vector<16x1xf32> to vector<16x1xf32>
      %44 = vector.broadcast %43 : vector<16x1xf32> to vector<16x128xf32>
      %c0_21 = arith.constant 0 : index
      %c0_22 = arith.constant 0 : index
      %45 = vector.load %arg7[%c0_21, %c0_22] : memref<16x128xf32, #tpu.memory_space<vmem>>, vector<16x128xf32>
      tpu.vector_store %arg7[%c0_21, %c0_22], %44 {strides = array<i32>} : memref<16x128xf32, #tpu.memory_space<vmem>>, vector<16x128xf32>,
    } else {
    }
    return
  }
  func.func @transform_0(%arg0: i32, %arg1: i32) -> (i32, i32) {
    %c0_i32 = arith.constant 0 : i32
    return %arg0, %arg1 : i32, i32
  }
  func.func @transform_1(%arg0: i32, %arg1: i32) -> (i32, i32) {
    %c0_i32 = arith.constant 0 : i32
    %c0_i32_0 = arith.constant 0 : i32
    %c0_i32_1 = arith.constant 0 : i32
    return %c0_i32, %c0_i32_0 : i32, i32
  }
  func.func @transform_2(%arg0: i32, %arg1: i32) -> (i32, i32) {
    %c0_i32 = arith.constant 0 : i32
    %c0_i32_0 = arith.constant 0 : i32
    %c0_i32_1 = arith.constant 0 : i32
    return %c0_i32, %c0_i32_0 : i32, i32
  }
  func.func @transform_3(%arg0: i32, %arg1: i32) -> (i32, i32) {
    %c0_i32 = arith.constant 0 : i32
    %c0_i32_0 = arith.constant 0 : i32
    return %arg0, %c0_i32 : i32, i32
  }
  func.func @transform_4(%arg0: i32, %arg1: i32) -> (i32, i32) {
    %c0_i32 = arith.constant 0 : i32
    %c0_i32_0 = arith.constant 0 : i32
    return %arg0, %c0_i32 : i32, i32
  }
  func.func @transform_5(%arg0: i32, %arg1: i32) -> (i32, i32) {
    %c0_i32 = arith.constant 0 : i32
    %c0_i32_0 = arith.constant 0 : i32
    return %arg0, %c0_i32 : i32, i32
  }
}

</mosaic_0001>

<bundles_post_ra>
// kernel: tpu_custom_call.1
= control target key start
LH: loop header
LB: loop body
LE: loop exit
PB: predicated region body
PF: predicated region fallthrough
CT: control target
= control target key end

     0   :  { %11 = vsyncpa [#allocation3], 0  ;;  %s1301_s0 = inlined_call_operand.hbm [shape: f32[16,1024], index: 0, kind: input, shape index: {}]   ;;  %s1302_s1 = inlined_call_operand.hbm [shape: bf16[1024,128], index: 1, kind: input, shape index: {}]   ;;  %s1303_s2 = inlined_call_operand.vmem [shape: f32[1,128], index: 2, kind: input, shape index: {}]   ;;  %s1304_s3 = inlined_call_operand.vmem [shape: s32[16,1], index: 3, kind: input, shape index: {}]   ;;  %s1305_s4 = inlined_call_operand.hbm [shape: f32[16,128], index: 4, kind: output, shape index: {0}]   ;;  %s1306_s5 = inlined_call_operand.hbm [shape: f32[16,128], index: 5, kind: output, shape index: {1}]  }
   0x1   :  { %12 = vsyncpa [#allocation6], 0 }
   0x2   :  { %13 = vsyncpa [#allocation4], 0 }
   0x3   :  { %14 = vsyncpa [#allocation9], 0  ;;  %s1203_s18 = smov [#allocation2]   ;;  %s1107_s22 = scalar_lea.hbm %s1301_s0, 2048 }
   0x4   :  { %s20_s19 = sshll.u32 %s1203_s18, 4  ;;  %p1108_p0 = scmp.ne.s32.totalorder %s1301_s0, %s1107_s22  ;;  %s21_s19 = int_to_ptr.vmem [resolvable:$true] %s20_s19 }
   0x5   :  { %p1111_p1 = scmp.lt.u32.totalorder %s1107_s22, %s1301_s0 }
   0x7   :  { %p1113_p2 = pnand %p1111_p1, %p1108_p0 }
   0x9   :  { %1116 = shalt.err (!%p1113_p2)
}
   0xa   :  { %s1117_s27 = scalar_lea.vmem %s21_s19, 2048  ;;  %p1122_p4 = scmp.lt.s32.totalorder %s21_s19, %s21_s19 }
   0xb   :  { %p1118_p3 = scmp.ne.s32.totalorder %s21_s19, %s1117_s27  ;;  %p1123_p5 = scmp.lt.s32.totalorder %s1117_s27, %s1117_s27 }
   0xd   :  { %p1124_p6 = por %p1123_p5, %p1122_p4 }
   0xf   :  { %p1125_p7 = pnand %p1124_p6, %p1118_p3 }
  0x11   :  { %1128 = shalt.err (!%p1125_p7)
}
  0x12   :  { %s1204_s28 = smov 1024   ;;  %s1205_s29 = smov 64  }
  0x13   :  { %26 = dma.hbm_to_vmem [thread:$0]  %s1301_s0, 2048, %s21_s19, [#allocation3], %s1204_s28, %s1204_s28, %s1205_s29  }
  0x14   :  { %s1206_s7 = smov [#allocation5]   ;;  %s1129_s11 = scalar_lea.hbm %s1302_s1, 8192 }
  0x15   :  { %s32_s8 = sshll.u32 %s1206_s7, 4  ;;  %p1130_p8 = scmp.ne.s32.totalorder %s1302_s1, %s1129_s11  ;;  %s33_s8 = int_to_ptr.vmem [resolvable:$true] %s32_s8 }
  0x16   :  { %p1133_p9 = scmp.lt.u32.totalorder %s1129_s11, %s1302_s1 }
  0x18   :  { %p1135_p10 = pnand %p1133_p9, %p1130_p8 }
  0x1a   :  { %1138 = shalt.err (!%p1135_p10)
}
  0x1b   :  { %s1139_s16 = scalar_lea.vmem %s33_s8, 8192  ;;  %p1144_p12 = scmp.lt.s32.totalorder %s33_s8, %s33_s8 }
  0x1c   :  { %p1140_p11 = scmp.ne.s32.totalorder %s33_s8, %s1139_s16  ;;  %p1145_p13 = scmp.lt.s32.totalorder %s1139_s16, %s1139_s16 }
  0x1e   :  { %p1146_p0 = por %p1145_p13, %p1144_p12 }
  0x20   :  { %p1147_p1 = pnand %p1146_p0, %p1140_p11 }
  0x22   :  { %1150 = shalt.err (!%p1147_p1)
}
  0x23   :  { %s1207_s0 = smov 4  }
  0x24   :  { %38 = dma.hbm_to_vmem [thread:$0]  %s1302_s1, 8192, %s33_s8, [#allocation6], %s1205_s29, %s1205_s29, %s1207_s0  }
  0x25   :  { %1195 = dma.done.wait [#allocation3], 2048  }
  0x26   :  { %1196 = vsyncadd [#allocation3], 4294965248 }
  0x27   :  { %1197 = dma.done.wait [#allocation6], 8192  }
  0x28   :  { %1198 = vsyncadd [#allocation6], 4294959104  ;;  %v1035_v0 = vld [vmem:[#allocation5 + $0x40] sm:$0xff]   ;;  %v1039_v4 = vld [vmem:[#allocation5 + $0x48] sm:$0xff]  }
  0x29   :  { %v1036_v1 = vld [vmem:[#allocation5 + $0xc0] sm:$0xff]   ;;  %934 = vmatprep.subr.bf16.mxu0 %v1035_v0  ;;  %v1040_v5 = vld [vmem:[#allocation5 + $0xc8] sm:$0xff]   ;;  %v1043_v8 = vld [vmem:[#allocation5 + $0x50] sm:$0xff]  }
  0x2a   :  { %v1037_v2 = vld [vmem:[#allocation5] sm:$0xff]   ;;  %956 = vmatprep.subr.bf16.mxu1 %v1036_v1  ;;  %v1041_v6 = vld [vmem:[#allocation5 + $0x8] sm:$0xff]   ;;  %v1044_v9 = vld [vmem:[#allocation5 + $0xd0] sm:$0xff]  }
  0x2b   :  { %v1038_v3 = vld [vmem:[#allocation5 + $0x80] sm:$0xff]   ;;  %935 = vmatpush3.bf16.msra.mxu0 %v1037_v2  ;;  %v1042_v7 = vld [vmem:[#allocation5 + $0x88] sm:$0xff]   ;;  %v1045_v10 = vld [vmem:[#allocation5 + $0x10] sm:$0xff]  }
  0x2c   :  { %957 = vmatpush3.bf16.msra.mxu1 %v1038_v3  ;;  %936 = vmatprep.subr.bf16.mxu0 %v1039_v4  ;;  %v1046_v11 = vld [vmem:[#allocation5 + $0x90] sm:$0xff]   ;;  %v1047_v12 = vld [vmem:[#allocation5 + $0x58] sm:$0xff]   ;;  %v1051_v16 = vld [vmem:[#allocation5 + $0x60] sm:$0xff]  }
  0x2d   :  { %958 = vmatprep.subr.bf16.mxu1 %v1040_v5  ;;  %v1048_v13 = vld [vmem:[#allocation5 + $0xd8] sm:$0xff]   ;;  %v1052_v17 = vld [vmem:[#allocation5 + $0xe0] sm:$0xff]   ;;  %v1055_v20 = vld [vmem:[#allocation5 + $0x68] sm:$0xff]  }
  0x2e   :  { %v1049_v14 = vld [vmem:[#allocation5 + $0x18] sm:$0xff]   ;;  %v1053_v18 = vld [vmem:[#allocation5 + $0x20] sm:$0xff]   ;;  %v1056_v21 = vld [vmem:[#allocation5 + $0xe8] sm:$0xff]  }
  0x2f   :  { %937 = vmatpush3.bf16.msra.mxu0 %v1041_v6  ;;  %v1050_v15 = vld [vmem:[#allocation5 + $0x98] sm:$0xff]   ;;  %v1054_v19 = vld [vmem:[#allocation5 + $0xa0] sm:$0xff]   ;;  %v1057_v22 = vld [vmem:[#allocation5 + $0x28] sm:$0xff]  }
  0x30   :  { %959 = vmatpush3.bf16.msra.mxu1 %v1042_v7  ;;  %938 = vmatprep.subr.bf16.mxu0 %v1043_v8  ;;  %v1058_v23 = vld [vmem:[#allocation5 + $0xa8] sm:$0xff]   ;;  %v1059_v24 = vld [vmem:[#allocation5 + $0x70] sm:$0xff]   ;;  %v1063_v28 = vld [vmem:[#allocation5 + $0x78] sm:$0xff]  }
  0x31   :  { %960 = vmatprep.subr.bf16.mxu1 %v1044_v9  ;;  %v1060_v25 = vld [vmem:[#allocation5 + $0xf0] sm:$0xff]   ;;  %v1064_v29 = vld [vmem:[#allocation5 + $0xf8] sm:$0xff]   ;;  %v57_v32 = vld [vmem:[#allocation2 + $0x8] sm:$0xff] }
  0x32   :  { %v1061_v26 = vld [vmem:[#allocation5 + $0x30] sm:$0xff]   ;;  %v1065_v30 = vld [vmem:[#allocation5 + $0x38] sm:$0xff]   ;;  %v65_v33 = vld [vmem:[#allocation2 + $0x48] sm:$0xff] }
  0x33   :  { %939 = vmatpush3.bf16.msra.mxu0 %v1045_v10  ;;  %v1062_v27 = vld [vmem:[#allocation5 + $0xb0] sm:$0xff]   ;;  %v1066_v31 = vld [vmem:[#allocation5 + $0xb8] sm:$0xff]   ;;  %v73_v35 = vpack.c.bf16 %v65_v33, %v57_v32  ;;  %v56_v37 = vld [vmem:[#allocation2] sm:$0xff] }
  0x34   :  { %961 = vmatpush3.bf16.msra.mxu1 %v1046_v11  ;;  %940 = vmatprep.subr.bf16.mxu0 %v1047_v12  ;;  %v59_v34 = vld [vmem:[#allocation2 + $0x18] sm:$0xff]  ;;  %v64_v38 = vld [vmem:[#allocation2 + $0x40] sm:$0xff]  ;;  %v58_v41 = vld [vmem:[#allocation2 + $0x10] sm:$0xff] }
  0x35   :  { %962 = vmatprep.subr.bf16.mxu1 %v1048_v13  ;;  %v67_v36 = vld [vmem:[#allocation2 + $0x58] sm:$0xff]  ;;  %v72_v40 = vpack.c.bf16 %v64_v38, %v56_v37  ;;  %v66_v42 = vld [vmem:[#allocation2 + $0x50] sm:$0xff]  ;;  %631 = vmatprep.mubr.bf16.mxu0 %v73_v35  ;;  %v1067_v44 = vld [vmem:[#allocation5 + $0x140] sm:$0xff]  }
  0x36   :  { %v75_v39 = vpack.c.bf16 %v67_v36, %v59_v34  ;;  %v74_v43 = vpack.c.bf16 %v66_v42, %v58_v41  ;;  %v1068_v45 = vld [vmem:[#allocation5 + $0x1c0] sm:$0xff]   ;;  %v1071_v48 = vld [vmem:[#allocation5 + $0x148] sm:$0xff]   ;;  %v1075_v52 = vld [vmem:[#allocation5 + $0x150] sm:$0xff]  }
  0x37   :  { %941 = vmatpush3.bf16.msra.mxu0 %v1049_v14  ;;  %v1069_v46 = vld [vmem:[#allocation5 + $0x100] sm:$0xff]   ;;  %v1072_v49 = vld [vmem:[#allocation5 + $0x1c8] sm:$0xff]   ;;  %v1076_v53 = vld [vmem:[#allocation5 + $0x1d0] sm:$0xff]  }
  0x38   :  { %963 = vmatpush3.bf16.msra.mxu1 %v1050_v15  ;;  %942 = vmatprep.subr.bf16.mxu0 %v1051_v16  ;;  %v1070_v47 = vld [vmem:[#allocation5 + $0x180] sm:$0xff]   ;;  %v1073_v50 = vld [vmem:[#allocation5 + $0x108] sm:$0xff]   ;;  %v1077_v54 = vld [vmem:[#allocation5 + $0x110] sm:$0xff]  }
  0x39   :  { %964 = vmatprep.subr.bf16.mxu1 %v1052_v17  ;;  %672 = vmatprep.mubr.bf16.mxu1 %v75_v39  ;;  %v1074_v51 = vld [vmem:[#allocation5 + $0x188] sm:$0xff]   ;;  %v1078_v55 = vld [vmem:[#allocation5 + $0x190] sm:$0xff]   ;;  %v1079_v56 = vld [vmem:[#allocation5 + $0x158] sm:$0xff]  }
  0x3a   :  { %v1080_v57 = vld [vmem:[#allocation5 + $0x1d8] sm:$0xff]   ;;  %v1083_v60 = vld [vmem:[#allocation5 + $0x160] sm:$0xff]   ;;  %v1087_v0 = vld [vmem:[#allocation5 + $0x168] sm:$0xff]  }
  0x3b   :  { %943 = vmatpush3.bf16.msra.mxu0 %v1053_v18  ;;  %v1081_v58 = vld [vmem:[#allocation5 + $0x118] sm:$0xff]   ;;  %v1084_v61 = vld [vmem:[#allocation5 + $0x1e0] sm:$0xff]   ;;  %v1088_v1 = vld [vmem:[#allocation5 + $0x1e8] sm:$0xff]  }
  0x3c   :  { %965 = vmatpush3.bf16.msra.mxu1 %v1054_v19  ;;  %944 = vmatprep.subr.bf16.mxu0 %v1055_v20  ;;  %v1082_v59 = vld [vmem:[#allocation5 + $0x198] sm:$0xff]   ;;  %v1085_v62 = vld [vmem:[#allocation5 + $0x120] sm:$0xff]   ;;  %v1089_v2 = vld [vmem:[#allocation5 + $0x128] sm:$0xff]  }
  0x3d   :  { %966 = vmatprep.subr.bf16.mxu1 %v1056_v21  ;;  %v1086_v63 = vld [vmem:[#allocation5 + $0x1a0] sm:$0xff]   ;;  %v1090_v3 = vld [vmem:[#allocation5 + $0x1a8] sm:$0xff]   ;;  %v1091_v4 = vld [vmem:[#allocation5 + $0x170] sm:$0xff]  }
  0x3e   :  { %v1092_v5 = vld [vmem:[#allocation5 + $0x1f0] sm:$0xff]   ;;  %v1095_v8 = vld [vmem:[#allocation5 + $0x178] sm:$0xff]   ;;  %v61_v12 = vld [vmem:[#allocation2 + $0x28] sm:$0xff] }
  0x3f   :  { %945 = vmatpush3.bf16.msra.mxu0 %v1057_v22  ;;  %v1093_v6 = vld [vmem:[#allocation5 + $0x130] sm:$0xff]   ;;  %v1096_v9 = vld [vmem:[#allocation5 + $0x1f8] sm:$0xff]   ;;  %v69_v13 = vld [vmem:[#allocation2 + $0x68] sm:$0xff] }
  0x40   :  { %967 = vmatpush3.bf16.msra.mxu1 %v1058_v23  ;;  %946 = vmatprep.subr.bf16.mxu0 %v1059_v24  ;;  %v1094_v7 = vld [vmem:[#allocation5 + $0x1b0] sm:$0xff]   ;;  %v1097_v10 = vld [vmem:[#allocation5 + $0x138] sm:$0xff]   ;;  %v77_v16 = vpack.c.bf16 %v69_v13, %v61_v12  ;;  %v60_v18 = vld [vmem:[#allocation2 + $0x20] sm:$0xff] }
  0x41   :  { %968 = vmatprep.subr.bf16.mxu1 %v1060_v25  ;;  %v1098_v11 = vld [vmem:[#allocation5 + $0x1b8] sm:$0xff]   ;;  %v68_v19 = vld [vmem:[#allocation2 + $0x60] sm:$0xff]  ;;  %v62_v20 = vld [vmem:[#allocation2 + $0x30] sm:$0xff] }
  0x42   :  { %v63_v14 = vld [vmem:[#allocation2 + $0x38] sm:$0xff]  ;;  %v76_v21 = vpack.c.bf16 %v68_v19, %v60_v18  ;;  %v70_v22 = vld [vmem:[#allocation2 + $0x70] sm:$0xff] }
  0x43   :  { %947 = vmatpush3.bf16.msra.mxu0 %v1061_v26  ;;  %v71_v15 = vld [vmem:[#allocation2 + $0x78] sm:$0xff]  ;;  %v78_v23 = vpack.c.bf16 %v70_v22, %v62_v20 }
  0x44   :  { %969 = vmatpush3.bf16.msra.mxu1 %v1062_v27  ;;  %948 = vmatprep.subr.bf16.mxu0 %v1063_v28  ;;  %v79_v17 = vpack.c.bf16 %v71_v15, %v63_v14  ;;  %v1209_v14 = vmov 0.0  }
  0x45   :  { %970 = vmatprep.subr.bf16.mxu1 %v1064_v29 }
  0x47   :  { %949 = vmatpush3.bf16.msra.mxu0 %v1065_v30 }
  0x48   :  { %971 = vmatpush3.bf16.msra.mxu1 %v1066_v31  ;;  %978 = vmatprep.subr.bf16.mxu0 %v1067_v44 }
  0x49   :  { %1000 = vmatprep.subr.bf16.mxu1 %v1068_v45 }
  0x4a   :  { %632 = vmatmul.mubr.bf16.vlgmr.msra.gmra.mrb[0].mxu0 %v72_v40 }
  0x4b   :  { %673 = vmatmul.mubr.bf16.vlgmr.msra.gmra.mrb[0].mxu1 %v74_v43  ;;  %979 = vmatpush3.bf16.msra.mxu0 %v1069_v46 }
  0x4c   :  { %1001 = vmatpush3.bf16.msra.mxu1 %v1070_v47  ;;  %980 = vmatprep.subr.bf16.mxu0 %v1071_v48 }
  0x4d   :  { %1002 = vmatprep.subr.bf16.mxu1 %v1072_v49  ;;  %713 = vmatprep.mubr.bf16.mxu0 %v77_v16 }
  0x4e   :  { %754 = vmatprep.mubr.bf16.mxu1 %v79_v17 }
  0x4f   :  { %981 = vmatpush3.bf16.msra.mxu0 %v1073_v50 }
  0x50   :  { %1003 = vmatpush3.bf16.msra.mxu1 %v1074_v51  ;;  %982 = vmatprep.subr.bf16.mxu0 %v1075_v52 }
  0x51   :  { %1004 = vmatprep.subr.bf16.mxu1 %v1076_v53  ;;  %v931_v53 = vld [vmem:[%s1303_s2] ss:$0 sm:$0xff] }
  0x53   :  { %983 = vmatpush3.bf16.msra.mxu0 %v1077_v54 }
  0x54   :  { %1005 = vmatpush3.bf16.msra.mxu1 %v1078_v55  ;;  %984 = vmatprep.subr.bf16.mxu0 %v1079_v56 }
  0x55   :  { %1006 = vmatprep.subr.bf16.mxu1 %v1080_v57  ;;  %v805_v57 = vld [vmem:[%s1304_s3] sm:$0xff] }
  0x57   :  { %985 = vmatpush3.bf16.msra.mxu0 %v1081_v58  ;;  %v1208_v58 = vmov 0  }
  0x58   :  { %1007 = vmatpush3.bf16.msra.mxu1 %v1082_v59  ;;  %986 = vmatprep.subr.bf16.mxu0 %v1083_v60 }
  0x59   :  { %1008 = vmatprep.subr.bf16.mxu1 %v1084_v61  ;;  %1033 = vset.pattern.permute.xlu0 %v1208_v58 }
  0x5a   :  { %1034 = vset.pattern.permute.xlu1 %v1208_v58 }
  0x5b   :  { %987 = vmatpush3.bf16.msra.mxu0 %v1085_v62 }
  0x5c   :  { %1009 = vmatpush3.bf16.msra.mxu1 %v1086_v63  ;;  %988 = vmatprep.subr.bf16.mxu0 %v1087_v0 }
  0x5d   :  { %1010 = vmatprep.subr.bf16.mxu1 %v1088_v1 }
  0x5f   :  { %989 = vmatpush3.bf16.msra.mxu0 %v1089_v2 }
  0x60   :  { %1011 = vmatpush3.bf16.msra.mxu1 %v1090_v3  ;;  %990 = vmatprep.subr.bf16.mxu0 %v1091_v4  ;;  %v806_v3 = vld [vmem:[%s1304_s3 + $0x8] sm:$0xff]  ;;  %s1210_s3 = smov [#allocation7]  }
  0x61   :  { %1012 = vmatprep.subr.bf16.mxu1 %v1092_v5  ;;  %s836_s23 = sshll.u32 %s1210_s3, 4  ;;  %s837_s23 = int_to_ptr.vmem [resolvable:$true] %s836_s23 }
  0x62   :  { %s1151_s24 = scalar_lea.vmem %s837_s23, 256  ;;  %p1156_p3 = scmp.lt.s32.totalorder %s837_s23, %s837_s23 }
  0x63   :  { %991 = vmatpush3.bf16.msra.mxu0 %v1093_v6  ;;  %v807_v6 = vlaneseq  ;;  %p1152_p2 = scmp.ne.s32.totalorder %s837_s23, %s1151_s24  ;;  %p1157_p4 = scmp.lt.s32.totalorder %s1151_s24, %s1151_s24 }
  0x64   :  { %1013 = vmatpush3.bf16.msra.mxu1 %v1094_v7  ;;  %992 = vmatprep.subr.bf16.mxu0 %v1095_v8 }
  0x65   :  { %1014 = vmatprep.subr.bf16.mxu1 %v1096_v9  ;;  %v808_v7 = vand.u32 127, %v807_v6  ;;  %p1158_p5 = por %p1157_p4, %p1156_p3 }
  0x67   :  { %993 = vmatpush3.bf16.msra.mxu0 %v1097_v10  ;;  %p1159_p6 = pnand %p1158_p5, %p1152_p2 }
  0x68   :  { %1015 = vmatpush3.bf16.msra.mxu1 %v1098_v11 }
  0x6a   :  { %714 = vmatmul.mubr.bf16.vlgmr.msra.gmra.mrb[4].mxu0 %v76_v21 }
  0x6b   :  { %755 = vmatmul.mubr.bf16.vlgmr.msra.gmra.mrb[4].mxu1 %v78_v23 }
 0x11d   :  { %v950_v24 = vpop.f32.mrb[0].mxu0 }
 0x11e   :  { %v972_v25 = vpop.f32.mrb[0].mxu1  ;;  %v951_v26 = vpop.f32.mrb[1].mxu0 }
 0x11f   :  { %v952_v27 = vadd.f32 %v951_v26, %v950_v24  ;;  %v973_v28 = vpop.f32.mrb[1].mxu1  ;;  %v953_v29 = vpop.f32.mrb[2].mxu0 }
 0x120   :  { %v974_v30 = vadd.f32 %v973_v28, %v972_v25  ;;  %v975_v31 = vpop.f32.mrb[2].mxu1  ;;  %v954_v32 = vpop.f32.mrb[3].mxu0 }
 0x121   :  { %v955_v33 = vadd.f32 %v954_v32, %v953_v29  ;;  %v976_v34 = vpop.f32.mrb[3].mxu1 }
 0x122   :  { %v675_v35 = vadd.f32 %v974_v30, %v952_v27  ;;  %v977_v36 = vadd.f32 %v976_v34, %v975_v31 }
 0x124   :  { %v678_v37 = vadd.f32 %v977_v36, %v955_v33 }
 0x13d   :  { %v994_v38 = vpop.f32.mrb[4].mxu0 }
 0x13e   :  { %v1016_v39 = vpop.f32.mrb[4].mxu1  ;;  %v995_v40 = vpop.f32.mrb[5].mxu0 }
 0x13f   :  { %v996_v41 = vadd.f32 %v995_v40, %v994_v38  ;;  %v1017_v42 = vpop.f32.mrb[5].mxu1  ;;  %v997_v43 = vpop.f32.mrb[6].mxu0 }
 0x140   :  { %v1018_v44 = vadd.f32 %v1017_v42, %v1016_v39  ;;  %v1019_v45 = vpop.f32.mrb[6].mxu1  ;;  %v998_v46 = vpop.f32.mrb[7].mxu0 }
 0x141   :  { %v716_v47 = vadd.f32 %v996_v41, %v675_v35  ;;  %v999_v48 = vadd.f32 %v998_v46, %v997_v43  ;;  %v1020_v49 = vpop.f32.mrb[7].mxu1 }
 0x142   :  { %v1021_v50 = vadd.f32 %v1020_v49, %v1019_v45 }
 0x143   :  { %v757_v51 = vadd.f32 %v1018_v44, %v716_v47  ;;  %v719_v52 = vadd.f32 %v999_v48, %v678_v37 }
 0x145   :  { %v760_v54 = vadd.f32 %v1021_v50, %v719_v52  ;;  %v779_v55 = vadd.f32 %v931_v53, %v757_v51 }
 0x147   :  { %783 = vmax.xlane.f32.xlu0 %v779_v55  ;;  %781 = vst [vmem:[#allocation7] sm:$0xff] %v779_v55  ;;  %v780_v56 = vadd.f32 %v931_v53, %v760_v54 }
 0x149   :  { %782 = vst [vmem:[#allocation7 + $0x8] sm:$0xff] %v780_v56 }
 0x14b   :  { %785 = vmax.xlane.f32.xlu0 %v780_v56 }
 0x161   :  { %810 = vperm.xlu0 %1033, %v805_v57  }
 0x1d4   :  { %v784_v59 = vpop.xlane.xlu0 %783 }
 0x1d5   :  { %v787_v60 = vsub.f32 %v779_v55, %v784_v59 }
 0x1d7   :  { %v789_v61 = vmul.f32 1.442695, %v787_v60 }
 0x1d8   :  { %v786_v62 = vpop.xlane.xlu0 %785 }
 0x1d9   :  { %v788_v63 = vsub.f32 %v780_v56, %v786_v62  ;;  %1099 = vpow2.f32 %v789_v61 }
 0x1db   :  { %v791_v0 = vmul.f32 1.442695, %v788_v63 }
 0x1dd   :  { %1101 = vpow2.f32 %v791_v0 }
 0x1e0   :  { %v811_v8 = vpop.permute.xlu0 %810 }
 0x1e1   :  { %vm815_vm0 = vcmp.eq.s32.totalorder %v808_v7, %v811_v8 }
 0x1e2   :  { %v932_v15 = vsel %vm815_vm0, 1.0, %v1209_v14 }
 0x1e3   :  { %v1100_v1 = vpop.eup %1099 }
 0x1e4   :  { %793 = vadd.xlane.f32.xlu1 %v1100_v1 }
 0x1e7   :  { %v1102_v2 = vpop.eup %1101 }
 0x1e8   :  { %795 = vadd.xlane.f32.xlu1 %v1102_v2 }
 0x1f9   :  { %813 = vperm.xlu1 %1034, %v806_v3  }
 0x271   :  { %v794_v4 = vpop.xlane.xlu1 %793 }
 0x272   :  { %1103 = vlog2.f32 %v794_v4 }
 0x275   :  { %v796_v5 = vpop.xlane.xlu1 %795 }
 0x276   :  { %1105 = vlog2.f32 %v796_v5 }
 0x279   :  { %v814_v11 = vpop.permute.xlu1 %813 }
 0x27a   :  { %vm816_vm1 = vcmp.eq.s32.totalorder %v808_v7, %v814_v11 }
 0x27b   :  { %v933_v20 = vsel %vm816_vm1, 1.0, %v1209_v14 }
 0x27c   :  { %v1104_v9 = vpop.eup %1103 }
 0x27d   :  { %v798_v10 = vmul.f32 0.6931472, %v1104_v9 }
 0x27f   :  { %v801_v12 = vadd.f32 %v798_v10, %v784_v59 }
 0x280   :  { %v1106_v13 = vpop.eup %1105 }
 0x281   :  { %v800_v16 = vmul.f32 0.6931472, %v1106_v13  ;;  %v803_v17 = vsub.f32 %v779_v55, %v801_v12 }
 0x283   :  { %v802_v18 = vadd.f32 %v800_v16, %v786_v62  ;;  %v821_v19 = vmul.f32 %v932_v15, %v803_v17 }
 0x285   :  { %823 = vadd.xlane.f32.xlu1 %v821_v19  ;;  %v804_v21 = vsub.f32 %v780_v56, %v802_v18 }
 0x287   :  { %v822_v22 = vmul.f32 %v933_v20, %v804_v21 }
 0x289   :  { %825 = vadd.xlane.f32.xlu0 %v822_v22 }
 0x28a   :  { %1162 = shalt.err (!%p1159_p6)
}
 0x28b   :  { %s1163_s27 = scalar_lea.hbm %s1305_s4, 256 }
 0x28c   :  { %p1164_p7 = scmp.ne.s32.totalorder %s1305_s4, %s1163_s27  ;;  %p1167_p8 = scmp.lt.u32.totalorder %s1163_s27, %s1305_s4 }
 0x28e   :  { %p1169_p9 = pnand %p1167_p8, %p1164_p7 }
 0x290   :  { %1172 = shalt.err (!%p1169_p9)
}
 0x291   :  { %s1211_s7 = smov 128   ;;  %s1212_s8 = smov 8  }
 0x292   :  { %842 = dma.vmem_to_hbm [thread:$0]  %s837_s23, 256, %s1305_s4, [#allocation4], %s1211_s7, %s1211_s7, %s1212_s8  }
 0x293   :  { %s1213_s11 = smov [#allocation8]  }
 0x294   :  { %s848_s12 = sshll.u32 %s1213_s11, 4  ;;  %s849_s12 = int_to_ptr.vmem [resolvable:$true] %s848_s12 }
 0x295   :  { %s1173_s13 = scalar_lea.vmem %s849_s12, 256  ;;  %p1178_p11 = scmp.lt.s32.totalorder %s849_s12, %s849_s12 }
 0x296   :  { %p1174_p10 = scmp.ne.s32.totalorder %s849_s12, %s1173_s13  ;;  %p1179_p12 = scmp.lt.s32.totalorder %s1173_s13, %s1173_s13 }
 0x298   :  { %p1180_p13 = por %p1179_p12, %p1178_p11 }
 0x29a   :  { %p1181_p0 = pnand %p1180_p13, %p1174_p10 }
 0x312   :  { %v824_v23 = vpop.xlane.xlu1 %823 }
 0x313   :  { %v827_v24 = vsub.f32 0.0, %v824_v23 }
 0x315   :  { %829 = vst [vmem:[#allocation8] sm:$0xff] %v827_v24 }
 0x316   :  { %v826_v25 = vpop.xlane.xlu0 %825 }
 0x317   :  { %v828_v26 = vsub.f32 0.0, %v826_v25 }
 0x319   :  { %830 = vst [vmem:[#allocation8 + $0x8] sm:$0xff] %v828_v26 }
 0x31a   :  { %1184 = shalt.err (!%p1181_p0)
}
 0x31b   :  { %s1185_s4 = scalar_lea.hbm %s1306_s5, 256 }
 0x31c   :  { %p1186_p1 = scmp.ne.s32.totalorder %s1306_s5, %s1185_s4  ;;  %p1189_p2 = scmp.lt.u32.totalorder %s1185_s4, %s1306_s5 }
 0x31e   :  { %p1191_p3 = pnand %p1189_p2, %p1186_p1 }
 0x320   :  { %1194 = shalt.err (!%p1191_p3)
}
 0x321   :  { %854 = dma.vmem_to_hbm [thread:$0]  %s849_s12, 256, %s1306_s5, [#allocation9], %s1211_s7, %s1211_s7, %s1212_s8  }
 0x322   :  { %1199 = dma.done.wait [#allocation4], 256  }
 0x323   :  { %1200 = vsyncadd [#allocation4], 4294967040 }
 0x324   :  { %1201 = dma.done.wait [#allocation9], 256  }
 0x325   :  { %1202 = vsyncadd [#allocation9], 4294967040 }
 0x326   :  { %861 = vsyncpa [#allocation3], 1 }
 0x327   :  { %862 = vsyncpa [#allocation6], 1 }
 0x328   :  { %863 = vsyncpa [#allocation4], 1 }
 0x329   :  { %864 = vsyncpa [#allocation9], 1 }

</bundles_post_ra>
